<compile_context>
chip_gen: v6e
topology: v6e:2x2x1
jax: 0.10.0
libtpu: 0.0.40
codegen_flags: <defaults>
</compile_context>

<pallas_src>
import functools
import math

import jax
import jax.numpy as jnp
from jax.experimental import pallas as pl
from jax.experimental.pallas import tpu as pltpu


# ----------------------------- kernel helpers -----------------------------

def _layernorm(x, gamma, beta, eps=1e-5):
    mean = jnp.mean(x, axis=-1, keepdims=True)
    var = jnp.mean((x - mean) ** 2, axis=-1, keepdims=True)
    return (x - mean) * jax.lax.rsqrt(var + eps) * gamma + beta


def _gelu_exact(x):
    # pytext GeLU: x * 0.5 * (1 + erf(x / sqrt(2)))
    return 0.5 * x * (1.0 + jax.lax.erf(x / math.sqrt(2.0)))


# ------------------------------ Pallas kernel ------------------------------

def _transformer_stack_kernel(
        x_ref, mask_ref,
        wqkv_ref, bqkv_ref, wo_ref, bo_ref,
        g1_ref, be1_ref, w1_ref, b1_ref, w2_ref, b2_ref, g2_ref, be2_ref,
        o_ref, x_scr, *, num_heads):
    """One (layer, batch-element) grid step of the full transformer stack.

    x_ref: (1, T, D) f32 input tile (only consumed at layer 0).
    mask_ref: (1, 1, T) f32 key-padding mask (1.0 = padded).
    Weights are one layer's slice of the layer-stacked parameters:
      wqkv (1, D, 3D) bf16 (Q columns pre-scaled by 1/sqrt(hd)), bqkv (1, 1, 3D) f32,
      wo (1, D, D) bf16, bo (1, 1, D) f32, w1 (1, D, F) / w2 (1, F, D) bf16,
      biases / LayerNorm params f32.
    x_scr: (B, T, D) f32 VMEM scratch carrying the activation across layers.
    """
    layer = pl.program_id(0)
    b = pl.program_id(1)

    _, T, D = x_scr.shape
    H = num_heads
    hd = D // H

    # Layer 0 seeds the resident activation from the DMA'd input tile; later
    # layers read the previous layer's output, which is already in VMEM.
    @pl.when(layer == 0)
    def _():
        x_scr[b] = x_ref[0]

    x = x_scr[b]                                          # (T, D) f32
    xb = x.astype(jnp.bfloat16)

    # ---- fused QKV projection: one (T, D) @ (D, 3D) MXU pass ----
    qkv = jnp.dot(xb, wqkv_ref[0],
                  preferred_element_type=jnp.float32) + bqkv_ref[0]    # (T, 3D) f32

    # head split: static lane slices of the small activation, stacked on a new
    # major axis (cheap vs. the matmuls; keeps all matmuls full-width).
    qh = jnp.stack([qkv[:, h * hd:(h + 1) * hd] for h in range(H)], axis=0)
    kh = jnp.stack([qkv[:, D + h * hd:D + (h + 1) * hd] for h in range(H)], axis=0)
    vh = jnp.stack([qkv[:, 2 * D + h * hd:2 * D + (h + 1) * hd] for h in range(H)],
                   axis=0)                                             # (H, T, hd)

    # additive key-padding mask, kept in f32
    neg = jnp.where(mask_ref[...] > 0.5, -1e30, 0.0)                   # (1, 1, T)

    # scores / softmax (stats in f32), heads batched along the major axis
    s = jnp.einsum("hqd,hkd->hqk",
                   qh.astype(jnp.bfloat16), kh.astype(jnp.bfloat16),
                   preferred_element_type=jnp.float32) + neg           # (H, T, T)
    s = s - jnp.max(s, axis=-1, keepdims=True)
    e = jnp.exp(s)
    p = e * pl.reciprocal(jnp.sum(e, axis=-1, keepdims=True), approx=True)

    ctx = jnp.einsum("hqk,hkd->hqd",
                     p.astype(jnp.bfloat16), vh.astype(jnp.bfloat16),
                     preferred_element_type=jnp.float32)               # (H, T, hd)

    # merge heads back to (T, D); output projection is one full-depth dot.
    ctx_td = jnp.concatenate([ctx[h] for h in range(H)], axis=-1)      # (T, D)
    attn = jnp.dot(ctx_td.astype(jnp.bfloat16), wo_ref[0],
                   preferred_element_type=jnp.float32) + bo_ref[0]     # (T, D)

    # --- residual + LayerNorm (f32) ---
    x1 = _layernorm(x + attn, g1_ref[0], be1_ref[0])

    # --- ResidualMLP: Linear -> GeLU -> Linear, + residual ---
    hmid = _gelu_exact(
        jnp.dot(x1.astype(jnp.bfloat16), w1_ref[0],
                preferred_element_type=jnp.float32) + b1_ref[0])       # (T, F)
    mlp = jnp.dot(hmid.astype(jnp.bfloat16), w2_ref[0],
                  preferred_element_type=jnp.float32) + b2_ref[0]      # (T, D)

    # --- final LayerNorm ---
    out = _layernorm(x1 + mlp, g2_ref[0], be2_ref[0])

    x_scr[b] = out            # carry to the next layer
    o_ref[0, 0] = out         # per-layer state output


# --------------------------- parameter preparation --------------------------

_STACKED_ORDER = ["wqkv", "bqkv", "wo", "bo",
                  "g1", "be1", "w1", "b1", "w2", "b2", "g2", "be2"]


def prep_stacked_params(layer_params, num_heads):
    """One-time transform of pytext-style per-layer params into kernel layout.

    * folds the 1/sqrt(hd) query scale into the Q columns of wqkv / bqkv,
    * keeps the fused (D, 3D) projection layout (no per-head weight split),
    * casts matmul weights to bf16 (biases / LN params stay f32),
    * stacks all layers along a leading axis so a single pallas_call can index
      them with the layer grid axis (enables weight prefetch across layers).
    """
    per_layer = []
    for p in layer_params:
        D = p["wqkv"].shape[0]
        hd = D // num_heads
        scale = 1.0 / math.sqrt(hd)
        wqkv = p["wqkv"].at[:, :D].multiply(scale)
        bqkv = p["bqkv"].at[:, :D].multiply(scale)
        per_layer.append({
            "wqkv": wqkv.astype(jnp.bfloat16), "bqkv": bqkv,
            "wo": p["wo"].astype(jnp.bfloat16), "bo": p["bo"],
            "g1": p["g1"], "be1": p["be1"],
            "w1": p["w1"].astype(jnp.bfloat16), "b1": p["b1"],
            "w2": p["w2"].astype(jnp.bfloat16), "b2": p["b2"],
            "g2": p["g2"], "be2": p["be2"],
        })
    return {k: jnp.stack([lp[k] for lp in per_layer], axis=0)
            for k in _STACKED_ORDER}


# ------------------------------- VMEM budget --------------------------------

def _vmem_limit_bytes(B, T, D, H, F, L, stacked_weights):
    hd = D // H
    per_layer_w = sum(int(w.size) * w.dtype.itemsize for w in stacked_weights) // L
    io = 2 * (2 * T * D * 4 + T * 4)          # double-buffered x / state tiles + mask
    wbytes = 2 * per_layer_w                  # layer l resident + layer l+1 prefetch
    scr = B * T * D * 4                       # resident activation scratch
    tmp = 4 * (3 * H * T * T                  # scores s / e / p (f32)
               + 3 * T * D                    # fused qkv
               + 5 * H * T * hd               # qh/kh/vh + ctx (+ bf16 copies, approx)
               + 2 * T * F                    # GeLU intermediate
               + 8 * T * D)                   # residuals / LN temps / bf16 casts
    est = io + wbytes + scr + tmp
    try:
        cap = int(pltpu.get_tpu_info().vmem_capacity_bytes) * 3 // 4  # ~48MiB v7x, ~96MiB v5e/v6e
    except Exception:
        cap = 48 * 1024 * 1024
    return int(min(cap, max(32 * 1024 * 1024, (5 * est) // 4)))


# ------------------------------- Pallas wrapper -----------------------------

def accelerator_transformer_layers(encoded_tbd, padding_mask_bt, layer_params, num_heads):
    """Mirror of AcceleratorTransformerLayers.forward.

    encoded_tbd: (T, B, D) f32, padding_mask_bt: (B, T) bool (True = pad).
    Returns list of states [(T, B, D)] of length len(layer_params) + 1.
    """
    T, B, D = encoded_tbd.shape
    L = len(layer_params)
    F = layer_params[0]["w1"].shape[1]
    assert D % num_heads == 0

    stacked = prep_stacked_params(layer_params, num_heads)
    weights = [stacked[k] for k in _STACKED_ORDER]

    x_btd = jnp.transpose(encoded_tbd, (1, 0, 2))               # (B, T, D), batch-first
    mask = padding_mask_bt.astype(jnp.float32)[:, None, :]      # (B, 1, T)

    def wspec(arr):
        nd = arr.ndim
        # One layer's slice, full trailing dims; changes only when the layer
        # axis advances, so the default double-buffering prefetches layer l+1's
        # weights while layer l's last batch step computes.
        return pl.BlockSpec((1,) + tuple(arr.shape[1:]),
                            lambda l, b, nd=nd: (l,) + (0,) * (nd - 1))

    vmem_limit = _vmem_limit_bytes(B, T, D, num_heads, F, L, weights)
    kernel = functools.partial(_transformer_stack_kernel, num_heads=num_heads)

    states_lbtd = pl.pallas_call(
        kernel,
        out_shape=jax.ShapeDtypeStruct((L, B, T, D), jnp.float32),
        grid=(L, B),
        in_specs=[
            pl.BlockSpec((1, T, D), lambda l, b: (b, 0, 0)),    # input activations
            pl.BlockSpec((1, 1, T), lambda l, b: (b, 0, 0)),    # key-padding mask
        ] + [wspec(w) for w in weights],
        out_specs=pl.BlockSpec((1, 1, T, D), lambda l, b: (l, b, 0, 0)),
        scratch_shapes=[pltpu.VMEM((B, T, D), jnp.float32)],
        compiler_params=pltpu.CompilerParams(
            # Layer axis carries the activation through the scratch, batch axis
            # is kept "arbitrary" too so the cross-layer scratch dependence
            # never spans cores.
            dimension_semantics=("arbitrary", "arbitrary"),
            vmem_limit_bytes=vmem_limit),
    )(x_btd, mask, *weights)

    # TODO(synk): dropout layers inside the pytext layer are identity at
    # inference and are intentionally omitted.
    return [encoded_tbd] + [jnp.transpose(states_lbtd[l], (1, 0, 2)) for l in range(L)]


# ------------------------------ reference ---------------------------------

def _ref_layer(x, mask_bt, p, num_heads):
    B, T, D = x.shape
    hd = D // num_heads
    qkv = x @ p["wqkv"] + p["bqkv"]
    q, k, v = jnp.split(qkv, 3, axis=-1)
    q = q * (1.0 / math.sqrt(hd))
    qh = q.reshape(B, T, num_heads, hd).transpose(0, 2, 1, 3)
    kh = k.reshape(B, T, num_heads, hd).transpose(0, 2, 1, 3)
    vh = v.reshape(B, T, num_heads, hd).transpose(0, 2, 1, 3)
    s = jnp.einsum("bhqd,bhkd->bhqk", qh, kh)
    s = s + jnp.where(mask_bt[:, None, None, :] > 0.5, -1e30, 0.0)
    pr = jax.nn.softmax(s, axis=-1)
    attn = jnp.einsum("bhqk,bhkd->bhqd", pr, vh).transpose(0, 2, 1, 3).reshape(B, T, D)
    attn = attn @ p["wo"] + p["bo"]
    x1 = _layernorm(x + attn, p["g1"], p["be1"])
    h = _gelu_exact(x1 @ p["w1"] + p["b1"])
    x2 = x1 + (h @ p["w2"] + p["b2"])
    return _layernorm(x2, p["g2"], p["be2"])


def _ref_forward(encoded_tbd, padding_mask_bt, layer_params, num_heads):
    states = [encoded_tbd]
    x = jnp.transpose(encoded_tbd, (1, 0, 2))
    mask = padding_mask_bt.astype(jnp.float32)
    for p in layer_params:
        x = _ref_layer(x, mask, p, num_heads)
        states.append(jnp.transpose(x, (1, 0, 2)))
    return states


# --------------------------------- main ------------------------------------

def _init_layer_params(key, D, F):
    ks = jax.random.split(key, 8)
    s = 0.02
    return {
        "wqkv": jax.random.normal(ks[0], (D, 3 * D), jnp.float32) * s,
        "bqkv": jax.random.normal(ks[1], (1, 3 * D), jnp.float32) * s,
        "wo":   jax.random.normal(ks[2], (D, D), jnp.float32) * s,
        "bo":   jax.random.normal(ks[3], (1, D), jnp.float32) * s,
        "g1":   jnp.ones((1, D), jnp.float32),
        "be1":  jnp.zeros((1, D), jnp.float32),
        "w1":   jax.random.normal(ks[4], (D, F), jnp.float32) * s,
        "b1":   jax.random.normal(ks[5], (1, F), jnp.float32) * s,
        "w2":   jax.random.normal(ks[6], (F, D), jnp.float32) * s,
        "b2":   jax.random.normal(ks[7], (1, D), jnp.float32) * s,
        "g2":   jnp.ones((1, D), jnp.float32),
        "be2":  jnp.zeros((1, D), jnp.float32),
    }


if __name__ == "__main__":
    T, B, D, H, F, L = 8, 2, 32, 4, 128, 2

    root = jax.random.PRNGKey(0)
    k_x, k_layers = jax.random.split(root)
    encoded = jax.random.normal(k_x, (T, B, D), jnp.float32)          # (T, B, D)
    # padding mask: batch 0 has no padding, batch 1 has last 3 positions padded
    padding_mask = jnp.zeros((B, T), jnp.bool_).at[1, T - 3:].set(True)

    layer_keys = jax.random.split(k_layers, L)
    layer_params = [_init_layer_params(k, D, F) for k in layer_keys]

    states = accelerator_transformer_layers(encoded, padding_mask, layer_params, H)
    states = [jax.block_until_ready(s) for s in states]

    # Sanity check against a pure-f32 JAX reference.  The kernel runs its
    # matmuls with bf16 operands (f32 accumulation) and an approx EUP
    # reciprocal in the softmax, so the tolerance is set to the bf16 scale.
    ref_states = _ref_forward(encoded, padding_mask, layer_params, H)
    assert len(states) == L + 1
    for got, want in zip(states, ref_states):
        assert got.shape == (T, B, D)
        assert jnp.allclose(got, want, atol=1e-2, rtol=1e-2), \
            float(jnp.max(jnp.abs(got - want)))

    print("KERNEL_OK")
</pallas_src>

<mosaic_0001>
module attributes {stable_mosaic.version = 11 : i64} {
  func.func @_transformer_stack_kernel(%arg0: i32, %arg1: i32, %arg2: memref<1x8x32xf32, #tpu.memory_space<vmem>>, %arg3: memref<1x1x8xf32, #tpu.memory_space<vmem>>, %arg4: memref<1x32x96xbf16, #tpu.memory_space<vmem>>, %arg5: memref<1x1x96xf32, #tpu.memory_space<vmem>>, %arg6: memref<1x32x32xbf16, #tpu.memory_space<vmem>>, %arg7: memref<1x1x32xf32, #tpu.memory_space<vmem>>, %arg8: memref<1x1x32xf32, #tpu.memory_space<vmem>>, %arg9: memref<1x1x32xf32, #tpu.memory_space<vmem>>, %arg10: memref<1x32x128xbf16, #tpu.memory_space<vmem>>, %arg11: memref<1x1x128xf32, #tpu.memory_space<vmem>>, %arg12: memref<1x128x32xbf16, #tpu.memory_space<vmem>>, %arg13: memref<1x1x32xf32, #tpu.memory_space<vmem>>, %arg14: memref<1x1x32xf32, #tpu.memory_space<vmem>>, %arg15: memref<1x1x32xf32, #tpu.memory_space<vmem>>, %arg16: memref<1x1x8x32xf32, #tpu.memory_space<vmem>>, %arg17: memref<2x8x32xf32, #tpu.memory_space<vmem>>) attributes {dimension_semantics = [#tpu.dimension_semantics<arbitrary>, #tpu.dimension_semantics<arbitrary>], iteration_bounds = array<i64: 2, 2>, scalar_prefetch = 0 : i64, scratch_operands = 1 : i64, tpu.core_type = #tpu.core_type<tc>, window_params = [{transform_indices = @transform_0, window_bounds = array<i64: 1, 8, 32>}, {transform_indices = @transform_1, window_bounds = array<i64: 1, 1, 8>}, {transform_indices = @transform_2, window_bounds = array<i64: 1, 32, 96>}, {transform_indices = @transform_3, window_bounds = array<i64: 1, 1, 96>}, {transform_indices = @transform_4, window_bounds = array<i64: 1, 32, 32>}, {transform_indices = @transform_5, window_bounds = array<i64: 1, 1, 32>}, {transform_indices = @transform_6, window_bounds = array<i64: 1, 1, 32>}, {transform_indices = @transform_7, window_bounds = array<i64: 1, 1, 32>}, {transform_indices = @transform_8, window_bounds = array<i64: 1, 32, 128>}, {transform_indices = @transform_9, window_bounds = array<i64: 1, 1, 128>}, {transform_indices = @transform_10, window_bounds = array<i64: 1, 128, 32>}, {transform_indices = @transform_11, window_bounds = array<i64: 1, 1, 32>}, {transform_indices = @transform_12, window_bounds = array<i64: 1, 1, 32>}, {transform_indices = @transform_13, window_bounds = array<i64: 1, 1, 32>}, {transform_indices = @transform_14, window_bounds = array<i64: 1, 1, 8, 32>}]} {
    %c0_i32 = arith.constant 0 : i32
    %0 = arith.cmpi eq, %arg0, %c0_i32 : i32
    %1 = arith.extui %0 : i1 to i32
    %c0_i32_0 = arith.constant 0 : i32
    %2 = arith.cmpi ne, %1, %c0_i32_0 : i32
    scf.if %2 {
      %c0_70 = arith.constant 0 : index
      %c0_71 = arith.constant 0 : index
      %c0_72 = arith.constant 0 : index
      %167 = vector.load %arg2[%c0_70, %c0_71, %c0_72] : memref<1x8x32xf32, #tpu.memory_space<vmem>>, vector<1x8x32xf32>
      %168 = vector.shape_cast %167 : vector<1x8x32xf32> to vector<8x32xf32>
      %169 = arith.index_cast %arg1 : i32 to index
      %c0_73 = arith.constant 0 : index
      %c0_74 = arith.constant 0 : index
      %170 = vector.load %arg17[%169, %c0_73, %c0_74] : memref<2x8x32xf32, #tpu.memory_space<vmem>>, vector<1x8x32xf32>
      %171 = vector.shape_cast %170 : vector<1x8x32xf32> to vector<8x32xf32>
      %172 = vector.shape_cast %168 : vector<8x32xf32> to vector<1x8x32xf32>
      tpu.vector_store %arg17[%169, %c0_73, %c0_74], %172 {strides = array<i32>} : memref<2x8x32xf32, #tpu.memory_space<vmem>>, vector<1x8x32xf32>,
    } else {
    }
    %3 = arith.index_cast %arg1 : i32 to index
    %c0 = arith.constant 0 : index
    %c0_1 = arith.constant 0 : index
    %4 = vector.load %arg17[%3, %c0, %c0_1] : memref<2x8x32xf32, #tpu.memory_space<vmem>>, vector<1x8x32xf32>
    %5 = vector.shape_cast %4 : vector<1x8x32xf32> to vector<8x32xf32>
    %6 = arith.truncf %5 : vector<8x32xf32> to vector<8x32xbf16>
    %c0_2 = arith.constant 0 : index
    %c0_3 = arith.constant 0 : index
    %c0_4 = arith.constant 0 : index
    %7 = vector.load %arg4[%c0_2, %c0_3, %c0_4] : memref<1x32x96xbf16, #tpu.memory_space<vmem>>, vector<1x32x96xbf16>
    %8 = vector.shape_cast %7 : vector<1x32x96xbf16> to vector<32x96xbf16>
    %cst = arith.constant dense<0.000000e+00> : vector<8x96xf32>
    %9 = tpu.matmul %6, %8, %cst {dimension_numbers = #tpu.dot_dimension_numbers<[1], [0], [0], [1], [0, 0, 1, 1], [], []>} : vector<8x32xbf16>, vector<32x96xbf16>, vector<8x96xf32> -> vector<8x96xf32>
    %c0_5 = arith.constant 0 : index
    %c0_6 = arith.constant 0 : index
    %c0_7 = arith.constant 0 : index
    %10 = vector.load %arg5[%c0_5, %c0_6, %c0_7] : memref<1x1x96xf32, #tpu.memory_space<vmem>>, vector<1x1x96xf32>
    %11 = vector.shape_cast %10 : vector<1x1x96xf32> to vector<1x96xf32>
    %12 = vector.broadcast %11 : vector<1x96xf32> to vector<8x96xf32>
    %13 = arith.addf %9, %12 : vector<8x96xf32>
    %14 = vector.extract_strided_slice %13 {offsets = [0, 0], sizes = [8, 8], strides = [1, 1]} : vector<8x96xf32> to vector<8x8xf32>
    %15 = vector.extract_strided_slice %13 {offsets = [0, 8], sizes = [8, 8], strides = [1, 1]} : vector<8x96xf32> to vector<8x8xf32>
    %16 = vector.extract_strided_slice %13 {offsets = [0, 16], sizes = [8, 8], strides = [1, 1]} : vector<8x96xf32> to vector<8x8xf32>
    %17 = vector.extract_strided_slice %13 {offsets = [0, 24], sizes = [8, 8], strides = [1, 1]} : vector<8x96xf32> to vector<8x8xf32>
    %18 = vector.shape_cast %14 : vector<8x8xf32> to vector<1x8x8xf32>
    %19 = vector.shape_cast %15 : vector<8x8xf32> to vector<1x8x8xf32>
    %20 = vector.shape_cast %16 : vector<8x8xf32> to vector<1x8x8xf32>
    %21 = vector.shape_cast %17 : vector<8x8xf32> to vector<1x8x8xf32>
    %22 = tpu.concatenate %18, %19, %20, %21 in 0 : vector<1x8x8xf32>, vector<1x8x8xf32>, vector<1x8x8xf32>, vector<1x8x8xf32> -> vector<4x8x8xf32>
    %23 = vector.extract_strided_slice %13 {offsets = [0, 32], sizes = [8, 8], strides = [1, 1]} : vector<8x96xf32> to vector<8x8xf32>
    %24 = vector.extract_strided_slice %13 {offsets = [0, 40], sizes = [8, 8], strides = [1, 1]} : vector<8x96xf32> to vector<8x8xf32>
    %25 = vector.extract_strided_slice %13 {offsets = [0, 48], sizes = [8, 8], strides = [1, 1]} : vector<8x96xf32> to vector<8x8xf32>
    %26 = vector.extract_strided_slice %13 {offsets = [0, 56], sizes = [8, 8], strides = [1, 1]} : vector<8x96xf32> to vector<8x8xf32>
    %27 = vector.shape_cast %23 : vector<8x8xf32> to vector<1x8x8xf32>
    %28 = vector.shape_cast %24 : vector<8x8xf32> to vector<1x8x8xf32>
    %29 = vector.shape_cast %25 : vector<8x8xf32> to vector<1x8x8xf32>
    %30 = vector.shape_cast %26 : vector<8x8xf32> to vector<1x8x8xf32>
    %31 = tpu.concatenate %27, %28, %29, %30 in 0 : vector<1x8x8xf32>, vector<1x8x8xf32>, vector<1x8x8xf32>, vector<1x8x8xf32> -> vector<4x8x8xf32>
    %32 = vector.extract_strided_slice %13 {offsets = [0, 64], sizes = [8, 8], strides = [1, 1]} : vector<8x96xf32> to vector<8x8xf32>
    %33 = vector.extract_strided_slice %13 {offsets = [0, 72], sizes = [8, 8], strides = [1, 1]} : vector<8x96xf32> to vector<8x8xf32>
    %34 = vector.extract_strided_slice %13 {offsets = [0, 80], sizes = [8, 8], strides = [1, 1]} : vector<8x96xf32> to vector<8x8xf32>
    %35 = vector.extract_strided_slice %13 {offsets = [0, 88], sizes = [8, 8], strides = [1, 1]} : vector<8x96xf32> to vector<8x8xf32>
    %36 = vector.shape_cast %32 : vector<8x8xf32> to vector<1x8x8xf32>
    %37 = vector.shape_cast %33 : vector<8x8xf32> to vector<1x8x8xf32>
    %38 = vector.shape_cast %34 : vector<8x8xf32> to vector<1x8x8xf32>
    %39 = vector.shape_cast %35 : vector<8x8xf32> to vector<1x8x8xf32>
    %40 = tpu.concatenate %36, %37, %38, %39 in 0 : vector<1x8x8xf32>, vector<1x8x8xf32>, vector<1x8x8xf32>, vector<1x8x8xf32> -> vector<4x8x8xf32>
    %c0_8 = arith.constant 0 : index
    %c0_9 = arith.constant 0 : index
    %c0_10 = arith.constant 0 : index
    %41 = vector.load %arg3[%c0_8, %c0_9, %c0_10] : memref<1x1x8xf32, #tpu.memory_space<vmem>>, vector<1x1x8xf32>
    %cst_11 = arith.constant 5.000000e-01 : f32
    %42 = vector.broadcast %cst_11 : f32 to vector<1x1x8xf32>
    %43 = arith.cmpf ogt, %41, %42 : vector<1x1x8xf32>
    %cst_12 = arith.constant -1.000000e+30 : f32
    %cst_13 = arith.constant 0.000000e+00 : f32
    %44 = vector.broadcast %cst_12 : f32 to vector<1x1x8xf32>
    %45 = vector.broadcast %cst_13 : f32 to vector<1x1x8xf32>
    %46 = arith.select %43, %44, %45 : vector<1x1x8xi1>, vector<1x1x8xf32>
    %47 = arith.truncf %22 : vector<4x8x8xf32> to vector<4x8x8xbf16>
    %48 = arith.truncf %31 : vector<4x8x8xf32> to vector<4x8x8xbf16>
    "tpu.trace_start"() <{level = 10 : i32, message = "hqd,hkd->hqk"}> : () -> ()
    %cst_14 = arith.constant dense<0.000000e+00> : vector<4x8x8xf32>
    %49 = tpu.matmul %47, %48, %cst_14 {dimension_numbers = #tpu.dot_dimension_numbers<[2], [2], [1], [1], [0, 0, 0, 1, 1, 1], [0], [0]>} : vector<4x8x8xbf16>, vector<4x8x8xbf16>, vector<4x8x8xf32> -> vector<4x8x8xf32>
    "tpu.trace_stop"() : () -> ()
    %50 = vector.broadcast %46 : vector<1x1x8xf32> to vector<4x8x8xf32>
    %51 = arith.addf %49, %50 : vector<4x8x8xf32>
    %cst_15 = arith.constant dense<0xFF800000> : vector<4x8xf32>
    %52 = vector.multi_reduction <maximumf>, %51, %cst_15 [2] : vector<4x8x8xf32> to vector<4x8xf32>
    %53 = vector.shape_cast %52 : vector<4x8xf32> to vector<4x8x1xf32>
    %54 = vector.broadcast %53 : vector<4x8x1xf32> to vector<4x8x8xf32>
    %55 = arith.subf %51, %54 : vector<4x8x8xf32>
    %56 = math.exp %55 : vector<4x8x8xf32>
    %cst_16 = arith.constant dense<0.000000e+00> : vector<4x8xf32>
    %57 = vector.multi_reduction <add>, %56, %cst_16 [2] : vector<4x8x8xf32> to vector<4x8xf32>
    %58 = vector.shape_cast %57 : vector<4x8xf32> to vector<4x8x1xf32>
    %59 = tpu.reciprocal %58 {approx = true} : vector<4x8x1xf32> -> vector<4x8x1xf32>
    %60 = vector.broadcast %59 : vector<4x8x1xf32> to vector<4x8x8xf32>
    %61 = arith.mulf %56, %60 : vector<4x8x8xf32>
    %62 = arith.truncf %61 : vector<4x8x8xf32> to vector<4x8x8xbf16>
    %63 = arith.truncf %40 : vector<4x8x8xf32> to vector<4x8x8xbf16>
    "tpu.trace_start"() <{level = 10 : i32, message = "hqk,hkd->hqd"}> : () -> ()
    %cst_17 = arith.constant dense<0.000000e+00> : vector<4x8x8xf32>
    %64 = tpu.matmul %62, %63, %cst_17 {dimension_numbers = #tpu.dot_dimension_numbers<[2], [1], [1], [2], [0, 0, 0, 1, 1, 2], [0], [0]>} : vector<4x8x8xbf16>, vector<4x8x8xbf16>, vector<4x8x8xf32> -> vector<4x8x8xf32>
    "tpu.trace_stop"() : () -> ()
    %65 = vector.extract_strided_slice %64 {offsets = [0, 0, 0], sizes = [1, 8, 8], strides = [1, 1, 1]} : vector<4x8x8xf32> to vector<1x8x8xf32>
    %66 = vector.shape_cast %65 : vector<1x8x8xf32> to vector<8x8xf32>
    %67 = vector.extract_strided_slice %64 {offsets = [1, 0, 0], sizes = [1, 8, 8], strides = [1, 1, 1]} : vector<4x8x8xf32> to vector<1x8x8xf32>
    %68 = vector.shape_cast %67 : vector<1x8x8xf32> to vector<8x8xf32>
    %69 = vector.extract_strided_slice %64 {offsets = [2, 0, 0], sizes = [1, 8, 8], strides = [1, 1, 1]} : vector<4x8x8xf32> to vector<1x8x8xf32>
    %70 = vector.shape_cast %69 : vector<1x8x8xf32> to vector<8x8xf32>
    %71 = vector.extract_strided_slice %64 {offsets = [3, 0, 0], sizes = [1, 8, 8], strides = [1, 1, 1]} : vector<4x8x8xf32> to vector<1x8x8xf32>
    %72 = vector.shape_cast %71 : vector<1x8x8xf32> to vector<8x8xf32>
    %73 = tpu.concatenate %66, %68, %70, %72 in 1 : vector<8x8xf32>, vector<8x8xf32>, vector<8x8xf32>, vector<8x8xf32> -> vector<8x32xf32>
    %74 = arith.truncf %73 : vector<8x32xf32> to vector<8x32xbf16>
    %c0_18 = arith.constant 0 : index
    %c0_19 = arith.constant 0 : index
    %c0_20 = arith.constant 0 : index
    %75 = vector.load %arg6[%c0_18, %c0_19, %c0_20] : memref<1x32x32xbf16, #tpu.memory_space<vmem>>, vector<1x32x32xbf16>
    %76 = vector.shape_cast %75 : vector<1x32x32xbf16> to vector<32x32xbf16>
    %cst_21 = arith.constant dense<0.000000e+00> : vector<8x32xf32>
    %77 = tpu.matmul %74, %76, %cst_21 {dimension_numbers = #tpu.dot_dimension_numbers<[1], [0], [0], [1], [0, 0, 1, 1], [], []>} : vector<8x32xbf16>, vector<32x32xbf16>, vector<8x32xf32> -> vector<8x32xf32>
    %c0_22 = arith.constant 0 : index
    %c0_23 = arith.constant 0 : index
    %c0_24 = arith.constant 0 : index
    %78 = vector.load %arg7[%c0_22, %c0_23, %c0_24] : memref<1x1x32xf32, #tpu.memory_space<vmem>>, vector<1x1x32xf32>
    %79 = vector.shape_cast %78 : vector<1x1x32xf32> to vector<1x32xf32>
    %80 = vector.broadcast %79 : vector<1x32xf32> to vector<8x32xf32>
    %81 = arith.addf %77, %80 : vector<8x32xf32>
    %82 = arith.addf %5, %81 : vector<8x32xf32>
    %c0_25 = arith.constant 0 : index
    %c0_26 = arith.constant 0 : index
    %c0_27 = arith.constant 0 : index
    %83 = vector.load %arg8[%c0_25, %c0_26, %c0_27] : memref<1x1x32xf32, #tpu.memory_space<vmem>>, vector<1x1x32xf32>
    %84 = vector.shape_cast %83 : vector<1x1x32xf32> to vector<1x32xf32>
    %c0_28 = arith.constant 0 : index
    %c0_29 = arith.constant 0 : index
    %c0_30 = arith.constant 0 : index
    %85 = vector.load %arg9[%c0_28, %c0_29, %c0_30] : memref<1x1x32xf32, #tpu.memory_space<vmem>>, vector<1x1x32xf32>
    %86 = vector.shape_cast %85 : vector<1x1x32xf32> to vector<1x32xf32>
    %cst_31 = arith.constant dense<0.000000e+00> : vector<8xf32>
    %87 = vector.multi_reduction <add>, %82, %cst_31 [1] : vector<8x32xf32> to vector<8xf32>
    %88 = vector.shape_cast %87 : vector<8xf32> to vector<8x1xf32>
    %cst_32 = arith.constant 3.200000e+01 : f32
    %89 = vector.broadcast %cst_32 : f32 to vector<8x1xf32>
    %90 = arith.divf %88, %89 : vector<8x1xf32>
    %91 = vector.broadcast %90 : vector<8x1xf32> to vector<8x32xf32>
    %92 = arith.subf %82, %91 : vector<8x32xf32>
    %93 = arith.mulf %92, %92 : vector<8x32xf32>
    %cst_33 = arith.constant dense<0.000000e+00> : vector<8xf32>
    %94 = vector.multi_reduction <add>, %93, %cst_33 [1] : vector<8x32xf32> to vector<8xf32>
    %95 = vector.shape_cast %94 : vector<8xf32> to vector<8x1xf32>
    %cst_34 = arith.constant 3.200000e+01 : f32
    %96 = vector.broadcast %cst_34 : f32 to vector<8x1xf32>
    %97 = arith.divf %95, %96 : vector<8x1xf32>
    %98 = vector.broadcast %90 : vector<8x1xf32> to vector<8x32xf32>
    %99 = arith.subf %82, %98 : vector<8x32xf32>
    %cst_35 = arith.constant 9.99999974E-6 : f32
    %100 = vector.broadcast %cst_35 : f32 to vector<8x1xf32>
    %101 = arith.addf %97, %100 : vector<8x1xf32>
    %102 = math.rsqrt %101 : vector<8x1xf32>
    %103 = vector.broadcast %102 : vector<8x1xf32> to vector<8x32xf32>
    %104 = arith.mulf %99, %103 : vector<8x32xf32>
    %105 = vector.broadcast %84 : vector<1x32xf32> to vector<8x32xf32>
    %106 = arith.mulf %104, %105 : vector<8x32xf32>
    %107 = vector.broadcast %86 : vector<1x32xf32> to vector<8x32xf32>
    %108 = arith.addf %106, %107 : vector<8x32xf32>
    %109 = arith.truncf %108 : vector<8x32xf32> to vector<8x32xbf16>
    %c0_36 = arith.constant 0 : index
    %c0_37 = arith.constant 0 : index
    %c0_38 = arith.constant 0 : index
    %110 = vector.load %arg10[%c0_36, %c0_37, %c0_38] : memref<1x32x128xbf16, #tpu.memory_space<vmem>>, vector<1x32x128xbf16>
    %111 = vector.shape_cast %110 : vector<1x32x128xbf16> to vector<32x128xbf16>
    %cst_39 = arith.constant dense<0.000000e+00> : vector<8x128xf32>
    %112 = tpu.matmul %109, %111, %cst_39 {dimension_numbers = #tpu.dot_dimension_numbers<[1], [0], [0], [1], [0, 0, 1, 1], [], []>} : vector<8x32xbf16>, vector<32x128xbf16>, vector<8x128xf32> -> vector<8x128xf32>
    %c0_40 = arith.constant 0 : index
    %c0_41 = arith.constant 0 : index
    %c0_42 = arith.constant 0 : index
    %113 = vector.load %arg11[%c0_40, %c0_41, %c0_42] : memref<1x1x128xf32, #tpu.memory_space<vmem>>, vector<1x1x128xf32>
    %114 = vector.shape_cast %113 : vector<1x1x128xf32> to vector<1x128xf32>
    %115 = vector.broadcast %114 : vector<1x128xf32> to vector<8x128xf32>
    %116 = arith.addf %112, %115 : vector<8x128xf32>
    %cst_43 = arith.constant 5.000000e-01 : f32
    %117 = vector.broadcast %cst_43 : f32 to vector<8x128xf32>
    %118 = arith.mulf %117, %116 : vector<8x128xf32>
    %cst_44 = arith.constant 1.41421354 : f32
    %119 = vector.broadcast %cst_44 : f32 to vector<8x128xf32>
    %120 = arith.divf %116, %119 : vector<8x128xf32>
    %121 = math.erf %120 : vector<8x128xf32>
    %cst_45 = arith.constant 1.000000e+00 : f32
    %122 = vector.broadcast %cst_45 : f32 to vector<8x128xf32>
    %123 = arith.addf %122, %121 : vector<8x128xf32>
    %124 = arith.mulf %118, %123 : vector<8x128xf32>
    %125 = arith.truncf %124 : vector<8x128xf32> to vector<8x128xbf16>
    %c0_46 = arith.constant 0 : index
    %c0_47 = arith.constant 0 : index
    %c0_48 = arith.constant 0 : index
    %126 = vector.load %arg12[%c0_46, %c0_47, %c0_48] : memref<1x128x32xbf16, #tpu.memory_space<vmem>>, vector<1x128x32xbf16>
    %127 = vector.shape_cast %126 : vector<1x128x32xbf16> to vector<128x32xbf16>
    %cst_49 = arith.constant dense<0.000000e+00> : vector<8x32xf32>
    %128 = tpu.matmul %125, %127, %cst_49 {dimension_numbers = #tpu.dot_dimension_numbers<[1], [0], [0], [1], [0, 0, 1, 1], [], []>} : vector<8x128xbf16>, vector<128x32xbf16>, vector<8x32xf32> -> vector<8x32xf32>
    %c0_50 = arith.constant 0 : index
    %c0_51 = arith.constant 0 : index
    %c0_52 = arith.constant 0 : index
    %129 = vector.load %arg13[%c0_50, %c0_51, %c0_52] : memref<1x1x32xf32, #tpu.memory_space<vmem>>, vector<1x1x32xf32>
    %130 = vector.shape_cast %129 : vector<1x1x32xf32> to vector<1x32xf32>
    %131 = vector.broadcast %130 : vector<1x32xf32> to vector<8x32xf32>
    %132 = arith.addf %128, %131 : vector<8x32xf32>
    %133 = arith.addf %108, %132 : vector<8x32xf32>
    %c0_53 = arith.constant 0 : index
    %c0_54 = arith.constant 0 : index
    %c0_55 = arith.constant 0 : index
    %134 = vector.load %arg14[%c0_53, %c0_54, %c0_55] : memref<1x1x32xf32, #tpu.memory_space<vmem>>, vector<1x1x32xf32>
    %135 = vector.shape_cast %134 : vector<1x1x32xf32> to vector<1x32xf32>
    %c0_56 = arith.constant 0 : index
    %c0_57 = arith.constant 0 : index
    %c0_58 = arith.constant 0 : index
    %136 = vector.load %arg15[%c0_56, %c0_57, %c0_58] : memref<1x1x32xf32, #tpu.memory_space<vmem>>, vector<1x1x32xf32>
    %137 = vector.shape_cast %136 : vector<1x1x32xf32> to vector<1x32xf32>
    %cst_59 = arith.constant dense<0.000000e+00> : vector<8xf32>
    %138 = vector.multi_reduction <add>, %133, %cst_59 [1] : vector<8x32xf32> to vector<8xf32>
    %139 = vector.shape_cast %138 : vector<8xf32> to vector<8x1xf32>
    %cst_60 = arith.constant 3.200000e+01 : f32
    %140 = vector.broadcast %cst_60 : f32 to vector<8x1xf32>
    %141 = arith.divf %139, %140 : vector<8x1xf32>
    %142 = vector.broadcast %141 : vector<8x1xf32> to vector<8x32xf32>
    %143 = arith.subf %133, %142 : vector<8x32xf32>
    %144 = arith.mulf %143, %143 : vector<8x32xf32>
    %cst_61 = arith.constant dense<0.000000e+00> : vector<8xf32>
    %145 = vector.multi_reduction <add>, %144, %cst_61 [1] : vector<8x32xf32> to vector<8xf32>
    %146 = vector.shape_cast %145 : vector<8xf32> to vector<8x1xf32>
    %cst_62 = arith.constant 3.200000e+01 : f32
    %147 = vector.broadcast %cst_62 : f32 to vector<8x1xf32>
    %148 = arith.divf %146, %147 : vector<8x1xf32>
    %149 = vector.broadcast %141 : vector<8x1xf32> to vector<8x32xf32>
    %150 = arith.subf %133, %149 : vector<8x32xf32>
    %cst_63 = arith.constant 9.99999974E-6 : f32
    %151 = vector.broadcast %cst_63 : f32 to vector<8x1xf32>
    %152 = arith.addf %148, %151 : vector<8x1xf32>
    %153 = math.rsqrt %152 : vector<8x1xf32>
    %154 = vector.broadcast %153 : vector<8x1xf32> to vector<8x32xf32>
    %155 = arith.mulf %150, %154 : vector<8x32xf32>
    %156 = vector.broadcast %135 : vector<1x32xf32> to vector<8x32xf32>
    %157 = arith.mulf %155, %156 : vector<8x32xf32>
    %158 = vector.broadcast %137 : vector<1x32xf32> to vector<8x32xf32>
    %159 = arith.addf %157, %158 : vector<8x32xf32>
    %160 = arith.index_cast %arg1 : i32 to index
    %c0_64 = arith.constant 0 : index
    %c0_65 = arith.constant 0 : index
    %161 = vector.load %arg17[%160, %c0_64, %c0_65] : memref<2x8x32xf32, #tpu.memory_space<vmem>>, vector<1x8x32xf32>
    %162 = vector.shape_cast %161 : vector<1x8x32xf32> to vector<8x32xf32>
    %163 = vector.shape_cast %159 : vector<8x32xf32> to vector<1x8x32xf32>
    tpu.vector_store %arg17[%160, %c0_64, %c0_65], %163 {strides = array<i32>} : memref<2x8x32xf32, #tpu.memory_space<vmem>>, vector<1x8x32xf32>,
    %c0_66 = arith.constant 0 : index
    %c0_67 = arith.constant 0 : index
    %c0_68 = arith.constant 0 : index
    %c0_69 = arith.constant 0 : index
    %164 = vector.load %arg16[%c0_66, %c0_67, %c0_68, %c0_69] : memref<1x1x8x32xf32, #tpu.memory_space<vmem>>, vector<1x1x8x32xf32>
    %165 = vector.shape_cast %164 : vector<1x1x8x32xf32> to vector<8x32xf32>
    %166 = vector.shape_cast %159 : vector<8x32xf32> to vector<1x1x8x32xf32>
    tpu.vector_store %arg16[%c0_66, %c0_67, %c0_68, %c0_69], %166 {strides = array<i32>} : memref<1x1x8x32xf32, #tpu.memory_space<vmem>>, vector<1x1x8x32xf32>,
    return
  }
  func.func @transform_0(%arg0: i32, %arg1: i32) -> (i32, i32, i32) {
    %c0_i32 = arith.constant 0 : i32
    %c0_i32_0 = arith.constant 0 : i32
    %c0_i32_1 = arith.constant 0 : i32
    return %arg1, %c0_i32, %c0_i32_0 : i32, i32, i32
  }
  func.func @transform_1(%arg0: i32, %arg1: i32) -> (i32, i32, i32) {
    %c0_i32 = arith.constant 0 : i32
    %c0_i32_0 = arith.constant 0 : i32
    %c0_i32_1 = arith.constant 0 : i32
    return %arg1, %c0_i32, %c0_i32_0 : i32, i32, i32
  }
  func.func @transform_2(%arg0: i32, %arg1: i32) -> (i32, i32, i32) {
    %c0_i32 = arith.constant 0 : i32
    %c0_i32_0 = arith.constant 0 : i32
    %c0_i32_1 = arith.constant 0 : i32
    return %arg0, %c0_i32, %c0_i32_0 : i32, i32, i32
  }
  func.func @transform_3(%arg0: i32, %arg1: i32) -> (i32, i32, i32) {
    %c0_i32 = arith.constant 0 : i32
    %c0_i32_0 = arith.constant 0 : i32
    %c0_i32_1 = arith.constant 0 : i32
    return %arg0, %c0_i32, %c0_i32_0 : i32, i32, i32
  }
  func.func @transform_4(%arg0: i32, %arg1: i32) -> (i32, i32, i32) {
    %c0_i32 = arith.constant 0 : i32
    %c0_i32_0 = arith.constant 0 : i32
    %c0_i32_1 = arith.constant 0 : i32
    return %arg0, %c0_i32, %c0_i32_0 : i32, i32, i32
  }
  func.func @transform_5(%arg0: i32, %arg1: i32) -> (i32, i32, i32) {
    %c0_i32 = arith.constant 0 : i32
    %c0_i32_0 = arith.constant 0 : i32
    %c0_i32_1 = arith.constant 0 : i32
    return %arg0, %c0_i32, %c0_i32_0 : i32, i32, i32
  }
  func.func @transform_6(%arg0: i32, %arg1: i32) -> (i32, i32, i32) {
    %c0_i32 = arith.constant 0 : i32
    %c0_i32_0 = arith.constant 0 : i32
    %c0_i32_1 = arith.constant 0 : i32
    return %arg0, %c0_i32, %c0_i32_0 : i32, i32, i32
  }
  func.func @transform_7(%arg0: i32, %arg1: i32) -> (i32, i32, i32) {
    %c0_i32 = arith.constant 0 : i32
    %c0_i32_0 = arith.constant 0 : i32
    %c0_i32_1 = arith.constant 0 : i32
    return %arg0, %c0_i32, %c0_i32_0 : i32, i32, i32
  }
  func.func @transform_8(%arg0: i32, %arg1: i32) -> (i32, i32, i32) {
    %c0_i32 = arith.constant 0 : i32
    %c0_i32_0 = arith.constant 0 : i32
    %c0_i32_1 = arith.constant 0 : i32
    return %arg0, %c0_i32, %c0_i32_0 : i32, i32, i32
  }
  func.func @transform_9(%arg0: i32, %arg1: i32) -> (i32, i32, i32) {
    %c0_i32 = arith.constant 0 : i32
    %c0_i32_0 = arith.constant 0 : i32
    %c0_i32_1 = arith.constant 0 : i32
    return %arg0, %c0_i32, %c0_i32_0 : i32, i32, i32
  }
  func.func @transform_10(%arg0: i32, %arg1: i32) -> (i32, i32, i32) {
    %c0_i32 = arith.constant 0 : i32
    %c0_i32_0 = arith.constant 0 : i32
    %c0_i32_1 = arith.constant 0 : i32
    return %arg0, %c0_i32, %c0_i32_0 : i32, i32, i32
  }
  func.func @transform_11(%arg0: i32, %arg1: i32) -> (i32, i32, i32) {
    %c0_i32 = arith.constant 0 : i32
    %c0_i32_0 = arith.constant 0 : i32
    %c0_i32_1 = arith.constant 0 : i32
    return %arg0, %c0_i32, %c0_i32_0 : i32, i32, i32
  }
  func.func @transform_12(%arg0: i32, %arg1: i32) -> (i32, i32, i32) {
    %c0_i32 = arith.constant 0 : i32
    %c0_i32_0 = arith.constant 0 : i32
    %c0_i32_1 = arith.constant 0 : i32
    return %arg0, %c0_i32, %c0_i32_0 : i32, i32, i32
  }
  func.func @transform_13(%arg0: i32, %arg1: i32) -> (i32, i32, i32) {
    %c0_i32 = arith.constant 0 : i32
    %c0_i32_0 = arith.constant 0 : i32
    %c0_i32_1 = arith.constant 0 : i32
    return %arg0, %c0_i32, %c0_i32_0 : i32, i32, i32
  }
  func.func @transform_14(%arg0: i32, %arg1: i32) -> (i32, i32, i32, i32) {
    %c0_i32 = arith.constant 0 : i32
    %c0_i32_0 = arith.constant 0 : i32
    %c0_i32_1 = arith.constant 0 : i32
    return %arg0, %arg1, %c0_i32, %c0_i32_0 : i32, i32, i32, i32
  }
}

</mosaic_0001>

<bundles_post_ra>
// kernel: tpu_custom_call.1
= control target key start
LH: loop header
LB: loop body
LE: loop exit
PB: predicated region body
PF: predicated region fallthrough
CT: control target
= control target key end

     0   :  { %s2637_s0 = inlined_call_operand.vmem [shape: f32[2,8,32], index: 0, kind: input, shape index: {}]   ;;  %s2638_s1 = inlined_call_operand.vmem [shape: f32[2,1,8], index: 1, kind: input, shape index: {}]   ;;  %s2639_s2 = inlined_call_operand.vmem [shape: bf16[2,32,96], index: 2, kind: input, shape index: {}]   ;;  %s2640_s3 = inlined_call_operand.vmem [shape: f32[2,1,96], index: 3, kind: input, shape index: {}]   ;;  %s2641_s4 = inlined_call_operand.vmem [shape: bf16[2,32,32], index: 4, kind: input, shape index: {}]   ;;  %s2642_s5 = inlined_call_operand.vmem [shape: f32[2,1,32], index: 5, kind: input, shape index: {}]   ;;  %s2643_s6 = inlined_call_operand.vmem [shape: f32[2,1,32], index: 6, kind: input, shape index: {}]   ;;  %s2644_s7 = inlined_call_operand.vmem [shape: f32[2,1,32], index: 7, kind: input, shape index: {}]   ;;  %s2645_s8 = inlined_call_operand.vmem [shape: bf16[2,32,128], index: 8, kind: input, shape index: {}]   ;;  %s2646_s9 = inlined_call_operand.vmem [shape: f32[2,1,128], index: 9, kind: input, shape index: {}]   ;;  %s2647_s10 = inlined_call_operand.vmem [shape: bf16[2,128,32], index: 10, kind: input, shape index: {}]   ;;  %s2648_s11 = inlined_call_operand.vmem [shape: f32[2,1,32], index: 11, kind: input, shape index: {}]   ;;  %s2649_s12 = inlined_call_operand.vmem [shape: f32[2,1,32], index: 12, kind: input, shape index: {}]   ;;  %s2650_s13 = inlined_call_operand.vmem [shape: f32[2,1,32], index: 13, kind: input, shape index: {}]   ;;  %s2651_s14 = inlined_call_operand.hbm [shape: f32[2,2,8,32], index: 14, kind: output, shape index: {}]  }
   0x1   :  { %2669 = sst [smem:[#allocation19_spill]] %s2637_s0 }
   0x2   :  { %2670 = sst [smem:[#allocation20_spill]] %s2638_s1 }
   0x3   :  { %2671 = sst [smem:[#allocation21_spill]] %s2639_s2 }
   0x4   :  { %2672 = sst [smem:[#allocation22_spill]] %s2641_s4 }
   0x5   :  { %2673 = sst [smem:[#allocation23_spill]] %s2644_s7 }
   0x6   :  { %2674 = sst [smem:[#allocation24_spill]] %s2645_s8 }
   0x7   :  { %2675 = sst [smem:[#allocation25_spill]] %s2649_s12 }
   0x8   :  { %2676 = sst [smem:[#allocation26_spill]] %s2650_s13 }
   0x9   :  { %2677 = sst [smem:[#allocation27_spill]] %s2651_s14 }
   0xa   :  { %19 = vsyncpa [#allocation4], 0 }
   0xb   :  { %21 = vsyncpa [#allocation4 + $0x1], 0  ;;  %s2261_s29 = smov 0   ;;  %s2263_s30 = smov 0  }
   0xc   :  { %s2265_s15 = smov 0   ;;  %s2267_s16 = smov 0  }
   0xd   :  { %s2269_s17 = smov 0   ;;  %s2271_s18 = smov 0  }
   0xe   :  { %s2273_s19 = smov 0   ;;  %s2275_s20 = smov 0  }
   0xf LB: > { %2678 = sst [smem:[#allocation6_spill]] %s2145_s29  ;;  %s1778_s21 = sadd.s32 4294967295, %s2173_s20   ;;  %s2173_s20 = sphi %s2275_s20, %s27_s20   ;;  %s2169_s19 = sphi %s2273_s19, %s2728_s19   ;;  %s2165_s18 = sphi %s2271_s18, %s2727_s18   ;;  %s2161_s17 = sphi %s2269_s17, %s2726_s17   ;;  %s2157_s16 = sphi %s2267_s16, %s2725_s16   ;;  %s2153_s15 = sphi %s2265_s15, %s2724_s15   ;;  %s2149_s30 = sphi %s2263_s30, %s2723_s30   ;;  %s2145_s29 = sphi %s2261_s29, %s2722_s29  }
  0x10   : > { %2679 = sst [smem:[#allocation7_spill]] %s2149_s30  ;;  %s1779_s22 = sadd.s32 4294967294, %s2173_s20  }
  0x11   : > { %2680 = sst [smem:[#allocation8_spill]] %s2153_s15  ;;  %s36_s23 = sadd.s32 1, %s2165_s18 }
  0x12   : > { %2681 = sst [smem:[#allocation9_spill]] %s2157_s16  ;;  %p37_p0 = scmp.ge.s32.totalorder %s36_s23, 2 }
  0x13   : > { %2682 = sst [smem:[#allocation10_spill]] %s2161_s17  ;;  %s39_s24 = sadd.s32 1, %s2169_s19 }
  0x14   : > { %2683 = sst [smem:[#allocation11_spill]] %s2165_s18  ;;  %p422_p1 = scmp.ne.s32.totalorder %s2153_s15, %s2149_s30 }
  0x15   : > { %2684 = sst [smem:[#allocation12_spill]] %s2169_s19  ;;  %p423_p2 = scmp.eq.s32.totalorder %s1778_s21, 3 }
  0x16   : > { %2685 = sst [smem:[#allocation13_spill]] %s2173_s20  ;;  %s2730_s23 = smov (%p37_p0, %s36_s23), 0 }
  0x17   : > { %2686 = sst [smem:[#allocation14_spill]] %s2730_s23  ;;  %s2732_s24 = smov (!%p37_p0, %s39_s24), %s2169_s19 }
  0x18   : > { %s408_s25 = ssub.s32 %s2165_s18, %s2730_s23  ;;  %p2312_p3 = por %p423_p2, %p422_p1 }
  0x19   : > { %p41_p4 = scmp.ge.s32.totalorder %s2732_s24, 2  ;;  %p428_p5 = scmp.ne.s32.totalorder %s2149_s30, %s2145_s29 }
  0x1a   : > { %s2687_s26 = scalar_select %p2312_p3, 1, 0 }
  0x1b   : > { %p429_p6 = scmp.eq.s32.totalorder %s1779_s22, 3  ;;  %p1782_p7 = scmp.ge.s32.totalorder %s2173_s20, 1 }
  0x1c   : > { %2688 = sst [smem:[#allocation15_spill]] %s2687_s26  ;;  %s2734_s24 = smov (%p41_p4, %s2732_s24), 0 }
  0x1d   : > { %2689 = sst [smem:[#allocation16_spill]] %s2734_s24  ;;  %p2321_p8 = por %p429_p6, %p428_p5 }
  0x1e   : > { %p540_p9 = scmp.lt.s32.totalorder %s2173_s20, 5  ;;  %s407_s28 = ssub.s32 %s2169_s19, %s2734_s24 }
  0x1f   : > { %s2690_s27 = scalar_select %p2321_p8, 1, 0 }
  0x20   : > { %s412_s21 = sadd.s32 1, %s2153_s15  ;;  %s409_s14 = sor.u32 %s408_s25, %s407_s28 }
  0x21   : > { %2691 = sst [smem:[#allocation17_spill]] %s2690_s27  ;;  %p541_p10 = pnand %p1782_p7, %p540_p9 }
  0x22   : > { %p410_p11 = scmp.eq.s32.totalorder %s409_s14, 0  ;;  %s2656_s22 = sand.u32 (!%p541_p10), 1, %s2149_s30  }
  0x23   : > { %544 = sbr.rel (%p541_p10) target bundleno = 2578 (0xa12), region = 76  ;;  %p632_p12 = scmp.lt.s32.totalorder (!%p541_p10), %s2157_s16, 1 }
  0x24   : > { %s2330_s23 = scalar_select %p410_p11, %s2153_s15, %s412_s21  }
  0x25   : > { %s2336_s18 = sshll.u32 (!%p541_p10), %s2656_s22, 3  ;;  %p639_p13 = scmp.lt.s32.totalorder (!%p541_p10), %s2161_s17, 1 }
  0x26   : > { %2692 = sst [smem:[#allocation18_spill]] %s2330_s23  ;;  %s631_s12 = scalar_lea.vmem (!%p541_p10), [#allocation3], %s2336_s18 }
  0x27   : > { %s2694_s0 = sld [smem:[#allocation19_spill]] (!%p541_p10) }
  0x28   : > { %s2340_s24 = scalar_select %p632_p12, %s2157_s16, 1 }
  0x29   : > { %s2343_s14 = scalar_select %p639_p13, %s2161_s17, 1 }
  0x2a   : > { %s1784_s25 = sshll.u32 %s2340_s24, 3  ;;  %s2695_s2 = sld [smem:[#allocation21_spill]] }
  0x2b   : > { %s1834_s27 = sshll.u32 %s2343_s14, 4  ;;  %s2696_s4 = sld [smem:[#allocation22_spill]] }
  0x2c   : > { %s2698_s8 = sld [smem:[#allocation24_spill]]  ;;  %s668_s17 = scalar_lea.vmem %s2646_s9, %s2343_s14 }
  0x2d   : > { %s635_s15 = scalar_lea.vmem %s2694_s0, %s1784_s25  ;;  %s2699_s20 = sld [smem:[#allocation25_spill]] }
  0x2e   : > { %s2701_s13 = sld [smem:[#allocation10_spill]] }
  0x30   : > { %s643_s26 = scalar_lea.vmem %s2695_s2, %s1834_s27 }
  0x31   : > { %s2364_s28 = scalar_lea.vmem %s2696_s4, %s1834_s27  ;;  %s1837_s4 = sshll.u32 %s2343_s14, 6 }
  0x32   : > { %s2381_s16 = scalar_lea.vmem %s2698_s8, %s1834_s27  ;;  %s2395_s0 = scalar_lea.vmem %s2647_s10, %s1837_s4 }
  0x33   : > { %s679_s2 = scalar_lea.vmem %s2699_s20, %s2343_s14  ;;  %s2700_s8 = sld [smem:[#allocation26_spill]] }
  0x34   : > { %p1793_p0 = scmp.ne.s32.totalorder %s2701_s13, 0 }
  0x35   : > { %s2702_s22 = sld [smem:[#allocation9_spill]] (!%p1793_p0) }
  0x36   : > { %687 = sbr.rel (%p1793_p0) target bundleno = 62 (0x3e), region = 80 }
  0x39   : > { %s682_s7 = scalar_lea.vmem %s2700_s8, %s2343_s14 }
  0x3b   : > { %v688_v0 = vld [vmem:[%s635_s15] sm:$0xff]  ;;  %s1794_s21 = sshll.u32 %s2702_s22, 3  ;;  %vm691_vm0 = vcmask 261120  }
  0x3c   : > { %s690_s19 = scalar_lea.vmem [#allocation2], %s1794_s21 }
  0x3d   : > { %692 = vst.msk [vmem:[%s690_s19] sm:$0xff] %vm691_vm0, %v688_v0 }
  0x3e PF: > { %v2045_v1 = vld [vmem:[%s643_s26 + $0x8] sm:$0xff]   ;;  %s2703_s4 = sld [smem:[#allocation9_spill]]  ;;  %v2175_v2 = vmov 0.0   ;;  %v2046_v3 = vld [vmem:[%s643_s26] sm:$0xff]   ;;  %vm2176_vm1 = vmmov 0   ;;  %vm720_vm2 = vcmask 261120   ;;  %s2704_s20 = scalar_lea.vmem %s2640_s3, %s2343_s14  ;;  %v782_v27 = vlaneseq }
  0x3f   : > { %1872 = vmatprep.subr.bf16.mxu0 %v2175_v2  ;;  %1892 = vmatprep.subr.bf16.mxu1 %v2175_v2  ;;  %v1796_v6 = vld [vmem:[%s2704_s20] ss:$0 sm:$0xff]  ;;  %s2177_s23 = smov 104   ;;  %s2178_s25 = smov 120   ;;  %vm790_vm3 = vcmask 64512   ;;  %vm1037_vm5 = vcmask 1043456  }
  0x40   : > { %1873 = vmatpush3.bf16.msra.mxu0 %v2045_v1  ;;  %1876 = vmatprep.mubr.msk.bf16.mxu0 %vm2176_vm1, %v2175_v2  ;;  %s2179_s1 = smov 112   ;;  %s2180_s29 = smov 96   ;;  %v783_v29 = vshrl.u32 %v782_v27, 7  ;;  %vm1238_vm6 = vcmask 130048   ;;  %vm1240_vm7 = vcmask 195584  }
  0x41   : > { %1874 = vmatprep.subr.bf16.mxu0 %v2175_v2  ;;  %1894 = vmatprep.mubr.msk.bf16.mxu1 %vm2176_vm1, %v2175_v2  ;;  %s2705_s13 = sld [smem:[#allocation20_spill]]  ;;  %s2182_s21 = smov 8  }
  0x42   : > { %v784_v30 = vsub.s32 0, %v783_v29  ;;  %s2184_s26 = smov 24   ;;  %s2707_s20 = scalar_lea.vmem %s2642_s5, %s2343_s14 }
  0x43   : > { %s2709_s27 = sld [smem:[#allocation23_spill]] }
  0x44   : > { %s1795_s8 = sshll.u32 %s2703_s4, 3  ;;  %1875 = vmatpush3.bf16.msra.mxu0 %v2046_v3 }
  0x45   : > { %s2416_s15 = scalar_lea.vmem [#allocation2], %s1795_s8  ;;  %1880 = vmatprep.subr.bf16.mxu0 %v2175_v2  ;;  %s2183_s8 = smov 16  }
  0x46   : > { %v2419_v4 = vld [vmem:[%s2416_s15] sm:$0xff] }
  0x47   : > { %v696_v5 = vpack.c.bf16 %v2419_v4, %v2419_v4  ;;  %s2706_s22 = scalar_lea.vmem %s2705_s13, %s2340_s24  ;;  %s2181_s24 = smov 64  }
  0x48   : > { %v774_v28 = vld [vmem:[%s2706_s22] sm:$0x1]  ;;  %s2717_s22 = sld [smem:[#allocation27_spill]] }
  0x49   : > { %1877 = vmatmul.mubr.msk.bf16.vlgmr.msra.gmra.mxu0 %vm720_vm2, %v696_v5  ;;  %vm775_vm4 = vcmp.gt.f32.partialorder %v774_v28, 0.5  ;;  %s2710_s30 = scalar_lea.vmem %s2709_s27, %s2343_s14 }
  0x4a   : > { %1882 = vmatprep.mubr.msk.bf16.mxu0 %vm2176_vm1, %v2175_v2  ;;  %v776_v31 = vsel %vm775_vm4, -1e+30, %v2175_v2 }
  0x4b   : > { %v785_v32 = vrot.slane %v776_v31, %v784_v30 }
 0x109   : > { %v758_v7 = vpop.f32.mrf.mxu0 }
 0x10a   : > { %v759_v8 = vadd.f32 %v1796_v6, %v758_v7 }
 0x10b   : > { %v1878_v9 = vpop.f32.mrf.mxu0 }
 0x10c   : > { %771 = vrot.lane.b32.xlu1 %v759_v8, %s2177_s23  ;;  %765 = vrot.lane.b32.xlu0 %v759_v8, %s2178_s25  ;;  %v2432_v11 = vpack.c.bf16 %v759_v8, %v759_v8  ;;  %s2708_s25 = scalar_lea.vmem %s2643_s6, %s2343_s14 }
 0x10d   : > { %v761_v10 = vpop.f32.mrf.mxu0 }
 0x10f   : > { %v1879_v12 = vpop.f32.mrf.mxu0 }
 0x110   : > { %768 = vrot.lane.b32.xlu0 %v759_v8, %s2179_s1  ;;  %788 = vrot.lane.b32.xlu1 %v2432_v11, %s2180_s29 }
 0x17e   : > { %v772_v13 = vpop.permute.xlu1 %771  ;;  %v766_v14 = vpop.permute.xlu0 %765 }
 0x17f   : > { %v2435_v15 = vpack.c.bf16 %v766_v14, %v766_v14  ;;  %v2438_v18 = vpack.c.bf16 %v772_v13, %v772_v13 }
 0x181   : > { %838 = vrot.lane.b32.xlu0 %v2435_v15, %s2180_s29 }
 0x182   : > { %v769_v16 = vpop.permute.xlu0 %768  ;;  %v789_v17 = vpop.permute.xlu1 %788 }
 0x183   : > { %v2440_v19 = vpack.c.bf16 %v769_v16, %v769_v16  ;;  %v795_v20 = vsel %vm790_vm3, %v789_v17, 0 }
 0x184   : > { %1881 = vmatpush3.bf16.xpose.msra.mxu0 %v795_v20 }
 0x185   : > { %936 = vrot.lane.b32.xlu0 %v2438_v18, %s2180_s29  ;;  %887 = vrot.lane.b32.xlu1 %v2440_v19, %s2180_s29 }
 0x186   : > { %1886 = vmatprep.subr.bf16.mxu0 %v2175_v2 }
 0x18b   : > { %1883 = vmatmul.mubr.msk.bf16.vlgmr.msra.gmra.mxu0 %vm790_vm3, %v2432_v11 }
 0x18c   : > { %1888 = vmatprep.mubr.msk.bf16.mxu0 %vm2176_vm1, %v2175_v2 }
 0x1f3   : > { %v839_v21 = vpop.permute.xlu0 %838 }
 0x1f4   : > { %v844_v22 = vsel %vm790_vm3, %v839_v21, 0 }
 0x1f5   : > { %1887 = vmatpush3.bf16.xpose.msra.mxu0 %v844_v22 }
 0x1f6   : > { %1898 = vmatprep.subr.bf16.mxu0 %v2175_v2 }
 0x1f7   : > { %v888_v23 = vpop.permute.xlu1 %887  ;;  %v937_v25 = vpop.permute.xlu0 %936 }
 0x1f8   : > { %v893_v24 = vsel %vm790_vm3, %v888_v23, 0  ;;  %v942_v26 = vsel %vm790_vm3, %v937_v25, 0 }
 0x1f9   : > { %1893 = vmatpush3.bf16.xpose.msra.mxu1 %v893_v24 }
 0x1fa   : > { %1904 = vmatprep.subr.bf16.mxu1 %v2175_v2 }
 0x1fc   : > { %1889 = vmatmul.mubr.msk.bf16.vlgmr.msra.gmra.mxu0 %vm790_vm3, %v2435_v15 }
 0x1fd   : > { %1899 = vmatpush3.bf16.xpose.msra.mxu0 %v942_v26  ;;  %1900 = vmatprep.mubr.msk.bf16.mxu0 %vm2176_vm1, %v2175_v2 }
 0x1fe   : > { %1910 = vmatprep.subr.bf16.mxu0 %v2175_v2 }
 0x200   : > { %1895 = vmatmul.mubr.msk.bf16.vlgmr.msra.gmra.mxu1 %vm790_vm3, %v2440_v19 }
 0x201   : > { %1906 = vmatprep.mubr.msk.bf16.mxu1 %vm2176_vm1, %v2175_v2 }
 0x204   : > { %1901 = vmatmul.mubr.msk.bf16.vlgmr.msra.gmra.mxu0 %vm790_vm3, %v2438_v18 }
 0x205   : > { %1912 = vmatprep.mubr.msk.bf16.mxu0 %vm2176_vm1, %v2175_v2 }
 0x24b   : > { %v831_v33 = vpop.f32.mrf.mxu0 }
 0x24c   : > { %v832_v34 = vadd.f32 %v831_v33, %v785_v32 }
 0x24d   : > { %v1884_v35 = vpop.f32.mrf.mxu0 }
 0x24e   : > { %v984_v36 = vsel %vm790_vm3, %v832_v34, -inf }
 0x24f   : > { %985 = vmax.xlane.f32.xlu1 %v984_v36  ;;  %v834_v37 = vpop.f32.mrf.mxu0 }
 0x251   : > { %v1885_v38 = vpop.f32.mrf.mxu0 }
 0x2bc   : > { %v880_v39 = vpop.f32.mrf.mxu0 }
 0x2bd   : > { %v881_v40 = vadd.f32 %v880_v39, %v785_v32 }
 0x2be   : > { %v1890_v41 = vpop.f32.mrf.mxu0 }
 0x2bf   : > { %v987_v42 = vsel %vm790_vm3, %v881_v40, -inf }
 0x2c0   : > { %v929_v43 = vpop.f32.mrf.mxu1  ;;  %988 = vmax.xlane.f32.xlu0 %v987_v42  ;;  %v883_v44 = vpop.f32.mrf.mxu0 }
 0x2c1   : > { %v930_v45 = vadd.f32 %v929_v43, %v785_v32  ;;  %v2047_v43 = vld [vmem:[%s2364_s28 + $0x8] sm:$0xff]   ;;  %v2048_v44 = vld [vmem:[%s2364_s28] sm:$0xff]  }
 0x2c2   : > { %v1891_v46 = vpop.f32.mrf.mxu0  ;;  %v1896_v47 = vpop.f32.mrf.mxu1 }
 0x2c3   : > { %v990_v48 = vsel %vm790_vm3, %v930_v45, -inf }
 0x2c4   : > { %v932_v49 = vpop.f32.mrf.mxu1  ;;  %991 = vmax.xlane.f32.xlu0 %v990_v48  ;;  %v978_v50 = vpop.f32.mrf.mxu0 }
 0x2c5   : > { %v979_v51 = vadd.f32 %v978_v50, %v785_v32 }
 0x2c6   : > { %v1897_v52 = vpop.f32.mrf.mxu1  ;;  %v1902_v53 = vpop.f32.mrf.mxu0 }
 0x2c7   : > { %v993_v54 = vsel %vm790_vm3, %v979_v51, -inf }
 0x2c8   : > { %994 = vmax.xlane.f32.xlu1 %v993_v54  ;;  %v981_v55 = vpop.f32.mrf.mxu0 }
 0x2ca   : > { %v1903_v56 = vpop.f32.mrf.mxu0 }
 0x2d8   : > { %v986_v57 = vpop.xlane.xlu1 %985 }
 0x2d9   : > { %1081 = vrot.lane.b32.xlu1 %v2435_v15, %s2181_s24  ;;  %v996_v58 = vsub.f32 %v832_v34, %v986_v57 }
 0x2da   : > { %1032 = vrot.lane.b32.xlu0 %v2432_v11, %s2181_s24 }
 0x2db   : > { %v1000_v59 = vmul.f32 1.442695, %v996_v58 }
 0x2dd   : > { %2059 = vpow2.f32 %v1000_v59 }
 0x2ea   : > { %v2060_v60 = vpop.eup %2059 }
 0x2eb   : > { %v1008_v61 = vsel %vm790_vm3, %v2060_v60, 0.0 }
 0x2f9   : > { %1009 = vadd.xlane.f32.xlu0 %v1008_v61 }
 0x349   : > { %v989_v62 = vpop.xlane.xlu0 %988 }
 0x34a   : > { %v997_v63 = vsub.f32 %v881_v40, %v989_v62 }
 0x34c   : > { %v1002_v0 = vmul.f32 1.442695, %v997_v63 }
 0x34d   : > { %v992_v1 = vpop.xlane.xlu0 %991 }
 0x34e   : > { %2061 = vpow2.f32 %v1002_v0  ;;  %v998_v3 = vsub.f32 %v930_v45, %v992_v1  ;;  %v1808_v0 = vld [vmem:[%s2707_s20] ss:$0 sm:$0xff] }
 0x350   : > { %v1004_v5 = vmul.f32 1.442695, %v998_v3 }
 0x351   : > { %v1033_v6 = vpop.permute.xlu0 %1032  ;;  %v995_v7 = vpop.xlane.xlu1 %994 }
 0x352   : > { %2063 = vpow2.f32 %v1004_v5  ;;  %v1039_v8 = vsel %vm1037_vm5, %v1033_v6, 0  ;;  %v999_v9 = vsub.f32 %v979_v51, %v995_v7 }
 0x353   : > { %1905 = vmatpush3.bf16.msra.mxu1 %v1039_v8 }
 0x354   : > { %v1006_v10 = vmul.f32 1.442695, %v999_v9  ;;  %1916 = vmatprep.subr.bf16.mxu1 %v2175_v2 }
 0x355   : > { %v1082_v11 = vpop.permute.xlu1 %1081 }
 0x356   : > { %2065 = vpow2.f32 %v1006_v10  ;;  %v1087_v12 = vsel %vm1037_vm5, %v1082_v11, 0 }
 0x357   : > { %1911 = vmatpush3.bf16.msra.mxu0 %v1087_v12 }
 0x358   : > { %1922 = vmatprep.subr.bf16.mxu0 %v2175_v2 }
 0x35b   : > { %v2062_v13 = vpop.eup %2061 }
 0x35c   : > { %v1011_v14 = vsel %vm790_vm3, %v2062_v13, 0.0 }
 0x35d   : > { %1012 = vadd.xlane.f32.xlu1 %v1011_v14 }
 0x35f   : > { %v2064_v15 = vpop.eup %2063 }
 0x360   : > { %v1014_v16 = vsel %vm790_vm3, %v2064_v15, 0.0 }
 0x361   : > { %1015 = vadd.xlane.f32.xlu0 %v1014_v16  ;;  %v2050_v16 = vld [vmem:[%s2381_s16] sm:$0xff]  }
 0x363   : > { %v2066_v17 = vpop.eup %2065 }
 0x364   : > { %v1017_v20 = vsel %vm790_vm3, %v2066_v17, 0.0 }
 0x365   : > { %1018 = vadd.xlane.f32.xlu1 %v1017_v20 }
 0x376   : > { %1129 = vrot.lane.b32.xlu1 %v2440_v19, %s2181_s24 }
 0x377   : > { %1177 = vrot.lane.b32.xlu0 %v2438_v18, %s2181_s24 }
 0x382   : > { %v1010_v21 = vpop.xlane.xlu0 %1009 }
 0x383   : > { %2067 = vrcp.f32 %v1010_v21 }
 0x390   : > { %v2068_v22 = vpop.eup %2067 }
 0x391   : > { %v1024_v23 = vmul.f32 %v2068_v22, %v2060_v60 }
 0x393   : > { %v1028_v24 = vpack.c.bf16 %v1024_v23, %v1024_v23 }
 0x395   : > { %1907 = vmatmul.mubr.msk.bf16.vlgmr.msra.gmra.mxu1 %vm790_vm3, %v1028_v24  ;;  %v1812_v24 = vld [vmem:[%s2708_s25] ss:$0 sm:$0xff] }
 0x396   : > { %1918 = vmatprep.mubr.msk.bf16.mxu1 %vm2176_vm1, %v2175_v2 }
 0x3e6   : > { %v1013_v25 = vpop.xlane.xlu1 %1012 }
 0x3e7   : > { %2069 = vrcp.f32 %v1013_v25 }
 0x3ea   : > { %v1016_v26 = vpop.xlane.xlu0 %1015 }
 0x3eb   : > { %2071 = vrcp.f32 %v1016_v26  ;;  %v1813_v26 = vld [vmem:[%s2710_s30] ss:$0 sm:$0xff]  ;;  %s1573_s30 = sshll.u32 %s631_s12, 4  ;;  %s1574_s30 = int_to_ptr.vmem [resolvable:$true] %s1573_s30 }
 0x3ee   : > { %v1019_v27 = vpop.xlane.xlu1 %1018  ;;  %v1178_v30 = vpop.permute.xlu0 %1177 }
 0x3ef   : > { %2073 = vrcp.f32 %v1019_v27  ;;  %v1183_v33 = vsel %vm1037_vm5, %v1178_v30, 0  ;;  %v2055_v30 = vld [vmem:[%s2395_s0 + $0x18] sm:$0xff]  }
 0x3f2   : > { %v1130_v19 = vpop.permute.xlu1 %1129 }
 0x3f3   : > { %v1135_v28 = vsel %vm1037_vm5, %v1130_v19, 0 }
 0x3f4   : > { %v2070_v18 = vpop.eup %2069  ;;  %1917 = vmatpush3.bf16.msra.mxu1 %v1135_v28 }
 0x3f5   : > { %v1025_v29 = vmul.f32 %v2070_v18, %v2062_v13  ;;  %1928 = vmatprep.subr.bf16.mxu1 %v2175_v2  ;;  %v2053_v18 = vld [vmem:[%s2395_s0 + $0x28] sm:$0xff]  }
 0x3f7   : > { %v1029_v31 = vpack.c.bf16 %v1025_v29, %v1025_v29  ;;  %v2054_v29 = vld [vmem:[%s2395_s0 + $0x20] sm:$0xff]  }
 0x3f8   : > { %v2072_v32 = vpop.eup %2071 }
 0x3f9   : > { %1913 = vmatmul.mubr.msk.bf16.vlgmr.msra.gmra.mxu0 %vm790_vm3, %v1029_v31  ;;  %v1026_v34 = vmul.f32 %v2072_v32, %v2064_v15  ;;  %v2049_v15 = vld [vmem:[%s2381_s16 + $0x8] sm:$0xff]   ;;  %v2056_v31 = vld [vmem:[%s2395_s0 + $0x10] sm:$0xff]  }
 0x3fa   : > { %1923 = vmatpush3.bf16.msra.mxu0 %v1183_v33  ;;  %1924 = vmatprep.mubr.msk.bf16.mxu0 %vm2176_vm1, %v2175_v2  ;;  %v2057_v32 = vld [vmem:[%s2395_s0 + $0x8] sm:$0xff]   ;;  %v2058_v33 = vld [vmem:[%s2395_s0] sm:$0xff]  }
 0x3fb   : > { %v1030_v35 = vpack.c.bf16 %v1026_v34, %v1026_v34  ;;  %1936 = vmatprep.subr.bf16.mxu0 %v2175_v2  ;;  %v1814_v34 = vld [vmem:[%s668_s17] ss:$0 sm:$0xff]  ;;  %s2712_s17 = sld [smem:[#allocation10_spill]] }
 0x3fc   : > { %v2074_v36 = vpop.eup %2073 }
 0x3fd   : > { %1919 = vmatmul.mubr.msk.bf16.vlgmr.msra.gmra.mxu1 %vm790_vm3, %v1030_v35  ;;  %v1027_v37 = vmul.f32 %v2074_v36, %v2066_v17  ;;  %v2052_v17 = vld [vmem:[%s2395_s0 + $0x30] sm:$0xff]  }
 0x3fe   : > { %1932 = vmatprep.mubr.msk.bf16.mxu1 %vm2176_vm1, %v2175_v2  ;;  %1929 = vmatpush3.bf16.msra.mxu1 %v2047_v43 }
 0x3ff   : > { %v1031_v38 = vpack.c.bf16 %v1027_v37, %v1027_v37  ;;  %1930 = vmatprep.subr.bf16.mxu1 %v2175_v2 }
 0x401   : > { %1925 = vmatmul.mubr.msk.bf16.vlgmr.msra.gmra.mxu0 %vm790_vm3, %v1031_v38 }
 0x402   : > { %1940 = vmatprep.mubr.msk.bf16.mxu0 %vm2176_vm1, %v2175_v2  ;;  %1931 = vmatpush3.bf16.msra.mxu1 %v2048_v44 }
 0x403   : > { %1944 = vmatprep.subr.bf16.mxu1 %v2175_v2  ;;  %1937 = vmatpush3.bf16.msra.mxu0 %v2049_v15 }
 0x404   : > { %1938 = vmatprep.subr.bf16.mxu0 %v2175_v2 }
 0x407   : > { %1939 = vmatpush3.bf16.msra.mxu0 %v2050_v16 }
 0x455   : > { %v1075_v39 = vpop.f32.mrf.mxu1 }
 0x457   : > { %v1908_v40 = vpop.f32.mrf.mxu1 }
 0x459   : > { %v1078_v41 = vpop.f32.mrf.mxu1 }
 0x45b   : > { %v1909_v42 = vpop.f32.mrf.mxu1 }
 0x4b9   : > { %v1123_v45 = vpop.f32.mrf.mxu0 }
 0x4ba   : > { %1226 = vrot.lane.b32.xlu1 %v1123_v45, %s2182_s21  ;;  %s2711_s21 = scalar_lea.vmem %s2648_s11, %s2343_s14  ;;  %s2081_s14 = scalar_lea.vmem %s1574_s30, 128 }
 0x4bb   : > { %v1914_v46 = vpop.f32.mrf.mxu0  ;;  %v1818_v45 = vld [vmem:[%s2711_s21] ss:$0 sm:$0xff]  ;;  %p2082_p1 = scmp.ne.s32.totalorder %s1574_s30, %s2081_s14 }
 0x4bd   : > { %v1126_v47 = vpop.f32.mrf.mxu0  ;;  %v1171_v48 = vpop.f32.mrf.mxu1  ;;  %p2083_p2 = pnand %p2082_p1, %p2312_p3 }
 0x4be   : > { %1230 = vrot.lane.b32.xlu0 %v1171_v48, %s2183_s8  ;;  %s2713_s8 = sld [smem:[#allocation7_spill]] }
 0x4bf   : > { %v1915_v49 = vpop.f32.mrf.mxu0  ;;  %v1920_v50 = vpop.f32.mrf.mxu1  ;;  %p2084_p4 = pneg %p2083_p2 }
 0x4c1   : > { %v1174_v51 = vpop.f32.mrf.mxu1  ;;  %v1219_v52 = vpop.f32.mrf.mxu0 }
 0x4c2   : > { %1234 = vrot.lane.b32.xlu1 %v1219_v52, %s2184_s26  ;;  %s1830_s26 = sshll.u32 %s2712_s17, 1 }
 0x4c3   : > { %v1921_v53 = vpop.f32.mrf.mxu1  ;;  %v1926_v54 = vpop.f32.mrf.mxu0  ;;  %s1569_s28 = sadd.s32 %s2703_s4, %s1830_s26 }
 0x4c4   : > { %s1831_s27 = sshll.u32 %s1569_s28, 7 }
 0x4c5   : > { %v1222_v55 = vpop.f32.mrf.mxu0 }
 0x4c7   : > { %v1927_v56 = vpop.f32.mrf.mxu0 }
 0x52c   : > { %v1227_v57 = vpop.permute.xlu1 %1226 }
 0x52d   : > { %v1237_v59 = vsel %vm790_vm3, %v1075_v39, %v1227_v57 }
 0x530   : > { %v1231_v58 = vpop.permute.xlu0 %1230 }
 0x531   : > { %v1239_v60 = vsel %vm1238_vm6, %v1237_v59, %v1231_v58 }
 0x534   : > { %v1235_v61 = vpop.permute.xlu1 %1234 }
 0x535   : > { %v1241_v62 = vsel %vm1240_vm7, %v1239_v60, %v1235_v61 }
 0x536   : > { %v1242_v63 = vpack.c.bf16 %v1241_v62, %v1241_v62  ;;  %v1827_v62 = vld [vmem:[%s679_s2] ss:$0 sm:$0xff]  ;;  %s2718_s2 = sand.u32 1, %s2713_s8  }
 0x537   : > { %s1558_s24 = scalar_lea.sflag [#allocation4], %s2718_s2 }
 0x538   : > { %1933 = vmatmul.mubr.msk.bf16.vlgmr.msra.gmra.mxu1 %vm720_vm2, %v1242_v63 }
 0x539   : > { %1960 = vmatprep.mubr.msk.bf16.mxu1 %vm2176_vm1, %v2175_v2 }
 0x5f8   : > { %v1303_v1 = vpop.f32.mrf.mxu1 }
 0x5f9   : > { %v1304_v3 = vadd.f32 %v1808_v0, %v1303_v1  ;;  %v1828_v0 = vld [vmem:[%s682_s7] ss:$0 sm:$0xff]  ;;  %s2185_s7 = smov [#allocation3]  }
 0x5fa   : > { %v1934_v5 = vpop.f32.mrf.mxu1  ;;  %s2085_s21 = sshll.u32 %s2185_s7, 4  ;;  %s2086_s21 = int_to_ptr.vmem [resolvable:$false] %s2085_s21 }
 0x5fb   : > { %v1309_v6 = vadd.f32 %v1304_v3, %v2419_v4  ;;  %v2051_v4 = vld [vmem:[%s2395_s0 + $0x38] sm:$0xff]   ;;  %s2584_s0 = scalar_lea.hbm %s2717_s22, %s1831_s27  ;;  %s2087_s17 = scalar_lea.vmem %s2086_s21, 256 }
 0x5fc   : > { %v1306_v7 = vpop.f32.mrf.mxu1  ;;  %1945 = vmatpush3.bf16.msra.mxu1 %v2051_v4  ;;  %p2088_p5 = scmp.lt.s32.totalorder %s1574_s30, %s2086_s21  ;;  %p2089_p6 = scmp.lt.s32.totalorder %s2087_s17, %s2081_s14 }
 0x5fd   : > { %v1312_v8 = vsel %vm720_vm2, %v1309_v6, 0.0  ;;  %1946 = vmatprep.subr.bf16.mxu1 %v2175_v2 }
 0x5fe   : > { %1313 = vadd.xlane.f32.xlu0 %v1312_v8  ;;  %v1935_v9 = vpop.f32.mrf.mxu1  ;;  %p2090_p7 = por %p2089_p6, %p2088_p5 }
 0x600   : > { %1947 = vmatpush3.bf16.msra.mxu1 %v2052_v17  ;;  %p2091_p9 = pnand %p2090_p7, %p2084_p4 }
 0x601   : > { %1948 = vmatprep.subr.bf16.mxu1 %v2175_v2 }
 0x604   : > { %1949 = vmatpush3.bf16.msra.mxu1 %v2053_v18 }
 0x605   : > { %1950 = vmatprep.subr.bf16.mxu1 %v2175_v2 }
 0x608   : > { %1951 = vmatpush3.bf16.msra.mxu1 %v2054_v29 }
 0x609   : > { %1952 = vmatprep.subr.bf16.mxu1 %v2175_v2 }
 0x60c   : > { %1953 = vmatpush3.bf16.msra.mxu1 %v2055_v30 }
 0x60d   : > { %1954 = vmatprep.subr.bf16.mxu1 %v2175_v2 }
 0x610   : > { %1955 = vmatpush3.bf16.msra.mxu1 %v2056_v31 }
 0x611   : > { %1956 = vmatprep.subr.bf16.mxu1 %v2175_v2 }
 0x614   : > { %1957 = vmatpush3.bf16.msra.mxu1 %v2057_v32 }
 0x615   : > { %1958 = vmatprep.subr.bf16.mxu1 %v2175_v2 }
 0x618   : > { %1959 = vmatpush3.bf16.msra.mxu1 %v2058_v33 }
 0x687   : > { %v1314_v10 = vpop.xlane.xlu0 %1313 }
 0x688   : > { %v1316_v11 = vmul.f32 0.03125, %v1314_v10 }
 0x68a   : > { %v1317_v12 = vsub.f32 %v1309_v6, %v1316_v11 }
 0x68c   : > { %v1318_v13 = vmul.f32 %v1317_v12, %v1317_v12 }
 0x68e   : > { %v1319_v14 = vsel %vm720_vm2, %v1318_v13, 0.0 }
 0x68f   : > { %1320 = vadd.xlane.f32.xlu1 %v1319_v14 }
 0x718   : > { %v1321_v20 = vpop.xlane.xlu1 %1320 }
 0x719   : > { %v1322_v21 = vmul.f32 0.03125, %v1321_v20 }
 0x71b   : > { %v1323_v22 = vadd.f32 1e-05, %v1322_v21 }
 0x71d   : > { %2075 = vrsqrt.f32 %v1323_v22 }
 0x72a   : > { %v2076_v23 = vpop.eup %2075 }
 0x72b   : > { %v1325_v25 = vmul.f32 %v2076_v23, %v1317_v12 }
 0x72d   : > { %v1332_v27 = vmul.f32 %v1812_v24, %v1325_v25 }
 0x72f   : > { %v1339_v19 = vadd.f32 %v1813_v26, %v1332_v27 }
 0x731   : > { %v1340_v28 = vpack.c.bf16 %v1339_v19, %v1339_v19 }
 0x733   : > { %1941 = vmatmul.mubr.msk.bf16.vlgmr.msra.gmra.mxu0 %vm720_vm2, %v1340_v28 }
 0x7f3   : > { %v1401_v35 = vpop.f32.mrf.mxu0 }
 0x7f4   : > { %v1402_v36 = vadd.f32 %v1814_v34, %v1401_v35 }
 0x7f5   : > { %v1942_v37 = vpop.f32.mrf.mxu0 }
 0x7f6   : > { %v1409_v38 = vmul.f32 0.70710677, %v1402_v36  ;;  %v1407_v42 = vmul.f32 0.5, %v1402_v36 }
 0x7f7   : > { %v1404_v39 = vpop.f32.mrf.mxu0 }
 0x7f8   : > { %2077 = verf.f32 %v1409_v38 }
 0x7f9   : > { %v1943_v40 = vpop.f32.mrf.mxu0 }
 0x805   : > { %v2078_v41 = vpop.eup %2077 }
 0x806   : > { %v1411_v43 = vadd.f32 1.0, %v2078_v41 }
 0x808   : > { %v1412_v44 = vmul.f32 %v1411_v43, %v1407_v42 }
 0x80a   : > { %v1413_v2 = vpack.c.bf16 %v1412_v44, %v1412_v44 }
 0x80c   : > { %1961 = vmatmul.mubr.bf16.vlgmr.msra.gmra.mxu1 %v1413_v2 }
 0x8cc   : > { %v1519_v46 = vpop.f32.mrf.mxu1 }
 0x8cd   : > { %v1520_v47 = vadd.f32 %v1818_v45, %v1519_v46 }
 0x8ce   : > { %v1962_v48 = vpop.f32.mrf.mxu1 }
 0x8cf   : > { %v1525_v49 = vadd.f32 %v1520_v47, %v1339_v19 }
 0x8d0   : > { %v1522_v50 = vpop.f32.mrf.mxu1 }
 0x8d1   : > { %v1528_v51 = vsel %vm720_vm2, %v1525_v49, 0.0 }
 0x8d2   : > { %1529 = vadd.xlane.f32.xlu0 %v1528_v51  ;;  %v1963_v52 = vpop.f32.mrf.mxu1 }
 0x95b   : > { %v1530_v53 = vpop.xlane.xlu0 %1529 }
 0x95c   : > { %v1531_v54 = vmul.f32 0.03125, %v1530_v53 }
 0x95e   : > { %v1532_v55 = vsub.f32 %v1525_v49, %v1531_v54 }
 0x960   : > { %v1533_v56 = vmul.f32 %v1532_v55, %v1532_v55 }
 0x962   : > { %v1534_v57 = vsel %vm720_vm2, %v1533_v56, 0.0 }
 0x963   : > { %1535 = vadd.xlane.f32.xlu0 %v1534_v57 }
 0x9ec   : > { %v1536_v58 = vpop.xlane.xlu0 %1535 }
 0x9ed   : > { %v1537_v59 = vmul.f32 0.03125, %v1536_v58 }
 0x9ef   : > { %v1538_v60 = vadd.f32 1e-05, %v1537_v59 }
 0x9f1   : > { %2079 = vrsqrt.f32 %v1538_v60 }
 0x9fe   : > { %v2080_v61 = vpop.eup %2079 }
 0x9ff   : > { %v1540_v63 = vmul.f32 %v2080_v61, %v1532_v55 }
 0xa01   : > { %v1547_v1 = vmul.f32 %v1827_v62, %v1540_v63 }
 0xa03   : > { %v1554_v3 = vadd.f32 %v1828_v0, %v1547_v1 }
 0xa05   : > { %1555 = vst.msk [vmem:[%s2416_s15] sm:$0xff] %vm720_vm2, %v1554_v3  ;;  %1556 = vst.msk [vmem:[%s631_s12] sm:$0xff] %vm720_vm2, %v1554_v3 }
 0xa06   : > { %2094 = shalt.err (!%p2091_p9)
}
 0xa07   : > { %s2095_s18 = scalar_lea.hbm %s2584_s0, 128  ;;  %s2099_s8 = scalar_lea.hbm %s2717_s22, 512 }
 0xa08   : > { %p2096_p10 = scmp.ne.s32.totalorder %s2584_s0, %s2095_s18  ;;  %p2100_p13 = scmp.lt.s32.totalorder %s2584_s0, %s2717_s22 }
 0xa09   : > { %p2101_p0 = scmp.lt.s32.totalorder %s2099_s8, %s2095_s18 }
 0xa0a   : > { %p2097_p11 = pnand %p2096_p10, %p2312_p3 }
 0xa0b   : > { %p2102_p1 = por %p2101_p0, %p2100_p13 }
 0xa0c   : > { %p2098_p12 = pneg %p2097_p11 }
 0xa0e   : > { %p2103_p2 = pnand %p2102_p1, %p2098_p12 }
 0xa10   : > { %2106 = shalt.err (!%p2103_p2)
}
 0xa11   : > { %1964 = dma.vmem_to_hbm [thread:$0]  (%p2312_p3), %s1574_s30, 128, %s2584_s0, %s1558_s24  }
 0xa12 PF: > { %s2719_s20 = sld [smem:[#allocation13_spill]] }
 0xa13   : > { %s2720_s16 = sld [smem:[#allocation6_spill]] }
 0xa18   : > { %p1970_p4 = scmp.ge.s32.totalorder %s2719_s20, 2 }
 0xa19   : > { %s1585_s25 = sand.u32 1, %s2720_s16  }
 0xa1a   : > { %p1967_p5 = pnand %p1970_p4, %p2321_p8  ;;  %s1586_s1 = scalar_lea.sflag [#allocation4], %s1585_s25 }
 0xa1c   : > { %p1968_p6 = pneg %p1967_p5 }
 0xa1e   : > { %2140 = dma.done.wait (%p1968_p6), %s1586_s1, 128  }
 0xa1f   : > { %2142 = vsyncadd (%p1968_p6), %s1586_s1, 4294967168  ;;  %s27_s20 = sadd.s32 1, %s2719_s20   ;;  %s2722_s29 = sld [smem:[#allocation7_spill]] }
 0xa20   : > { %p24_p7 = scmp.ge.s32.totalorder %s27_s20, 6   ;;  %s2723_s30 = sld [smem:[#allocation8_spill]] }
 0xa21   : > { %s2724_s15 = sld [smem:[#allocation18_spill]] }
 0xa22   : > { %s2725_s16 = sld [smem:[#allocation11_spill]]  ;;  %26 = sbr.rel (!%p24_p7) target bundleno = 15 (0xf), region = 156 }
 0xa23   : > { %s2726_s17 = sld [smem:[#allocation12_spill]] }
 0xa24   : > { %s2727_s18 = sld [smem:[#allocation14_spill]] }
 0xa25   : > { %s2728_s19 = sld [smem:[#allocation16_spill]] }
 0xa27   :  { %1591 = vsyncpa [#allocation4], 1 }
 0xa28   :  { %1593 = vsyncpa [#allocation4 + $0x1], 1 }

</bundles_post_ra>
